<compile_context>
chip_gen: v7x
topology: tpu7x:2x2x1
jax: 0.10.0
libtpu: 0.0.40
codegen_flags: <defaults>
</compile_context>

<pallas_src>
import math
import functools

import jax
import jax.numpy as jnp
from jax.experimental import pallas as pl
from jax.experimental.pallas import tpu as pltpu


def _mha_kernel(*refs, heads, d_k, has_mask):
    if has_mask:
        (q_ref, k_ref, v_ref, bias_ref,
         wq_ref, wk_ref, wv_ref, wfc_ref, bfc_ref,
         o_ref, qh_s, kh_s, vh_s) = refs
    else:
        (q_ref, k_ref, v_ref,
         wq_ref, wk_ref, wv_ref, wfc_ref, bfc_ref,
         o_ref, qh_s, kh_s, vh_s) = refs
        bias_ref = None

    qi = pl.program_id(1)

    # --- K/V projections: computed once per batch element, cached in VMEM ----
    @pl.when(qi == 0)
    def _():
        kp = jnp.dot(k_ref[0].astype(jnp.bfloat16), wk_ref[...],
                     preferred_element_type=jnp.float32).astype(jnp.bfloat16)
        vp = jnp.dot(v_ref[0].astype(jnp.bfloat16), wv_ref[...],
                     preferred_element_type=jnp.float32).astype(jnp.bfloat16)
        for h in range(heads):                      # one-time head split (copies)
            sl = slice(h * d_k, (h + 1) * d_k)
            kh_s[h] = kp[:, sl]
            vh_s[h] = vp[:, sl]

    # --- Q projection for this query tile (scale pre-folded into Wq) ---------
    qp = jnp.dot(q_ref[0].astype(jnp.bfloat16), wq_ref[...],
                 preferred_element_type=jnp.float32).astype(jnp.bfloat16)
    for h in range(heads):
        qh_s[h] = qp[:, h * d_k:(h + 1) * d_k]

    # --- Head-batched attention ----------------------------------------------
    scores = jnp.einsum('hqd,hkd->hqk', qh_s[...], kh_s[...],
                        preferred_element_type=jnp.float32)      # (H, TQ, S) f32
    if has_mask:
        scores = scores + bias_ref[0]                # additive -1e9 bias, all heads

    m = jnp.max(scores, axis=-1, keepdims=True)
    p = jnp.exp(scores - m)
    l = jnp.sum(p, axis=-1, keepdims=True)
    p = (p * pl.reciprocal(l, approx=True)).astype(jnp.bfloat16)
    # TODO(synk): attention-prob dropout omitted (nn.Dropout is identity in eval).

    ctx = jnp.einsum('hqk,hkd->hqd', p, vh_s[...],
                     preferred_element_type=jnp.float32)         # (H, TQ, d_k) f32

    # --- Output projection: per-head accumulation, no concat -----------------
    tq, d_model = o_ref.shape[1], o_ref.shape[2]
    acc = jnp.zeros((tq, d_model), jnp.float32)
    for h in range(heads):
        acc = acc + jnp.dot(ctx[h].astype(jnp.bfloat16), wfc_ref[h],
                            preferred_element_type=jnp.float32)
    o_ref[0] = (acc + bfc_ref[...]).astype(o_ref.dtype)


def _choose_q_tile(seq_len, heads):
    """Largest q tile that (a) divides the sequence and (b) keeps the f32
    score block (heads, tq, seq_len) under ~8 MiB of VMEM."""
    budget = 8 * 1024 * 1024
    max_tq = max(8, budget // (4 * heads * seq_len))
    for t in (512, 256, 128, 64, 32, 16, 8):
        if t <= max_tq and t <= seq_len and seq_len % t == 0:
            return t
    return seq_len


def multi_head_attention(q, k, v, params, heads, attn_mask=None):
    """q, k, v: (bs, S, d_model); attn_mask: optional (bs, S, S), 0 == masked.
    params = (wq, wk, wv, wfc, bfc); projection weights are stored pre-transposed
    as (d_model, d_model) so a projection is `x @ W` (== PyTorch `x @ weight.T`).
    Returns (bs, S, d_model)."""
    bs, S, D = q.shape
    d_k = D // heads
    wq, wk, wv, wfc, bfc = params

    # One-time wrapper-side weight prep: fold 1/sqrt(d_k) into Wq, cast the MXU
    # operands to bf16, pre-split the FC weight per head (free reshape).
    scale = 1.0 / math.sqrt(d_k)
    wq_c = (wq * scale).astype(jnp.bfloat16)
    wk_c = wk.astype(jnp.bfloat16)
    wv_c = wv.astype(jnp.bfloat16)
    wfc_c = wfc.reshape(heads, d_k, D).astype(jnp.bfloat16)
    bfc_c = bfc.reshape(1, D).astype(jnp.float32)

    tq = _choose_q_tile(S, heads)
    nq = S // tq
    has_mask = attn_mask is not None

    kernel = functools.partial(_mha_kernel, heads=heads, d_k=d_k, has_mask=has_mask)

    in_specs = [
        pl.BlockSpec((1, tq, D), lambda b, i: (b, i, 0)),      # q tile
        pl.BlockSpec((1, S, D), lambda b, i: (b, 0, 0)),       # k (full, per batch)
        pl.BlockSpec((1, S, D), lambda b, i: (b, 0, 0)),       # v (full, per batch)
    ]
    args = [q, k, v]
    if has_mask:
        # masked_fill(mask == 0, -1e9) as a precomputed additive bias.
        bias = jnp.where(attn_mask == 0, jnp.float32(-1e9), jnp.float32(0.0))
        in_specs.append(pl.BlockSpec((1, tq, S), lambda b, i: (b, i, 0)))
        args.append(bias)
    in_specs += [
        pl.BlockSpec((D, D), lambda b, i: (0, 0)),             # Wq (pre-scaled, bf16)
        pl.BlockSpec((D, D), lambda b, i: (0, 0)),             # Wk
        pl.BlockSpec((D, D), lambda b, i: (0, 0)),             # Wv
        pl.BlockSpec((heads, d_k, D), lambda b, i: (0, 0, 0)),  # W_fc pre-split per head
        pl.BlockSpec((1, D), lambda b, i: (0, 0)),             # b_fc
    ]
    args += [wq_c, wk_c, wv_c, wfc_c, bfc_c]

    flops = 8 * bs * S * D * D + 4 * bs * S * S * D
    bytes_accessed = 4 * bs * S * D * q.dtype.itemsize + 4 * D * D * 2
    if has_mask:
        bytes_accessed += bs * S * S * 4

    return pl.pallas_call(
        kernel,
        out_shape=jax.ShapeDtypeStruct((bs, S, D), q.dtype),
        grid=(bs, nq),
        in_specs=in_specs,
        out_specs=pl.BlockSpec((1, tq, D), lambda b, i: (b, i, 0)),
        scratch_shapes=[
            pltpu.VMEM((heads, tq, d_k), jnp.bfloat16),        # q heads (this tile)
            pltpu.VMEM((heads, S, d_k), jnp.bfloat16),         # cached K projection
            pltpu.VMEM((heads, S, d_k), jnp.bfloat16),         # cached V projection
        ],
        compiler_params=pltpu.CompilerParams(
            dimension_semantics=("parallel", "arbitrary"),
            vmem_limit_bytes=48 * 1024 * 1024,
        ),
        cost_estimate=pl.CostEstimate(
            flops=flops,
            transcendentals=bs * heads * S * S,
            bytes_accessed=bytes_accessed),
    )(*args)


def _reference(q, k, v, params, heads, attn_mask=None):
    """Plain-JAX f32 reference mirroring the PyTorch forward (eval mode)."""
    wq, wk, wv, wfc, bfc = params
    bs, S, D = q.shape
    d_k = D // heads

    def proj(x, w):
        return (x @ w).reshape(bs, S, heads, d_k).transpose(0, 2, 1, 3)

    qh, kh, vh = proj(q, wq), proj(k, wk), proj(v, wv)
    scores = jnp.einsum('bhqd,bhkd->bhqk', qh, kh) / math.sqrt(d_k)
    if attn_mask is not None:
        scores = jnp.where(attn_mask[:, None] == 0, -1e9, scores)
    p = jax.nn.softmax(scores, axis=-1)
    out = jnp.einsum('bhqk,bhkd->bhqd', p, vh)
    concat = out.transpose(0, 2, 1, 3).reshape(bs, S, D)
    return concat @ wfc + bfc.reshape(1, D)


def init_params(key, d_model):
    """Deterministic synthetic weights (PyTorch-Linear-style uniform init)."""
    bound = 1.0 / math.sqrt(d_model)
    ks = jax.random.split(key, 5)
    wq = jax.random.uniform(ks[0], (d_model, d_model), jnp.float32, -bound, bound)
    wk = jax.random.uniform(ks[1], (d_model, d_model), jnp.float32, -bound, bound)
    wv = jax.random.uniform(ks[2], (d_model, d_model), jnp.float32, -bound, bound)
    wfc = jax.random.uniform(ks[3], (d_model, d_model), jnp.float32, -bound, bound)
    bfc = jax.random.uniform(ks[4], (1, d_model), jnp.float32, -bound, bound)
    return wq, wk, wv, wfc, bfc


if __name__ == "__main__":
    bs, seq, d_model, heads = 2, 8, 32, 4

    root = jax.random.PRNGKey(0)
    kq, kk, kv, kp = jax.random.split(root, 4)
    q = jax.random.normal(kq, (bs, seq, d_model), jnp.float32)
    k = jax.random.normal(kk, (bs, seq, d_model), jnp.float32)
    v = jax.random.normal(kv, (bs, seq, d_model), jnp.float32)
    params = init_params(kp, d_model)

    # Mask-free path (no mask array is materialized or DMA'd).
    out = jax.block_until_ready(multi_head_attention(q, k, v, params, heads))
    ref = _reference(q, k, v, params, heads)
    assert out.shape == (bs, seq, d_model)
    # bf16 MXU operands (f32 accumulation / softmax) => ~1% tolerance vs f32 ref.
    assert jnp.allclose(out, ref, atol=3e-2, rtol=3e-2), "mismatch vs reference (no mask)"

    # Masked (causal) path: mask handled as a precomputed additive bias.
    mask = jnp.broadcast_to(jnp.tril(jnp.ones((seq, seq), jnp.float32)), (bs, seq, seq))
    out_m = jax.block_until_ready(
        multi_head_attention(q, k, v, params, heads, attn_mask=mask))
    ref_m = _reference(q, k, v, params, heads, attn_mask=mask)
    assert jnp.allclose(out_m, ref_m, atol=3e-2, rtol=3e-2), "mismatch vs reference (masked)"

    print("KERNEL_OK")
</pallas_src>

<mosaic_0001>
module attributes {stable_mosaic.version = 11 : i64} {
  func.func @_mha_kernel(%arg0: i32, %arg1: i32, %arg2: memref<1x8x32xf32, #tpu.memory_space<vmem>>, %arg3: memref<1x8x32xf32, #tpu.memory_space<vmem>>, %arg4: memref<1x8x32xf32, #tpu.memory_space<vmem>>, %arg5: memref<32x32xbf16, #tpu.memory_space<vmem>>, %arg6: memref<32x32xbf16, #tpu.memory_space<vmem>>, %arg7: memref<32x32xbf16, #tpu.memory_space<vmem>>, %arg8: memref<4x8x32xbf16, #tpu.memory_space<vmem>>, %arg9: memref<1x32xf32, #tpu.memory_space<vmem>>, %arg10: memref<1x8x32xf32, #tpu.memory_space<vmem>>, %arg11: memref<4x8x8xbf16, #tpu.memory_space<vmem>>, %arg12: memref<4x8x8xbf16, #tpu.memory_space<vmem>>, %arg13: memref<4x8x8xbf16, #tpu.memory_space<vmem>>) attributes {dimension_semantics = [#tpu.dimension_semantics<parallel>, #tpu.dimension_semantics<arbitrary>], iteration_bounds = array<i64: 2, 1>, scalar_prefetch = 0 : i64, scratch_operands = 3 : i64, tpu.core_type = #tpu.core_type<tc>, window_params = [{transform_indices = @transform_0, window_bounds = array<i64: 1, 8, 32>}, {transform_indices = @transform_1, window_bounds = array<i64: 1, 8, 32>}, {transform_indices = @transform_2, window_bounds = array<i64: 1, 8, 32>}, {pipeline_mode = #tpu.pipeline_mode<synchronous>, transform_indices = @transform_3, window_bounds = array<i64: 32, 32>}, {pipeline_mode = #tpu.pipeline_mode<synchronous>, transform_indices = @transform_4, window_bounds = array<i64: 32, 32>}, {pipeline_mode = #tpu.pipeline_mode<synchronous>, transform_indices = @transform_5, window_bounds = array<i64: 32, 32>}, {pipeline_mode = #tpu.pipeline_mode<synchronous>, transform_indices = @transform_6, window_bounds = array<i64: 4, 8, 32>}, {pipeline_mode = #tpu.pipeline_mode<synchronous>, transform_indices = @transform_7, window_bounds = array<i64: 1, 32>}, {transform_indices = @transform_8, window_bounds = array<i64: 1, 8, 32>}]} {
    %c0_i32 = arith.constant 0 : i32
    %0 = arith.cmpi eq, %arg1, %c0_i32 : i32
    %1 = arith.extui %0 : i1 to i32
    %c0_i32_0 = arith.constant 0 : i32
    %2 = arith.cmpi ne, %1, %c0_i32_0 : i32
    scf.if %2 {
      %c0_49 = arith.constant 0 : index
      %c0_50 = arith.constant 0 : index
      %c0_51 = arith.constant 0 : index
      %76 = vector.load %arg3[%c0_49, %c0_50, %c0_51] : memref<1x8x32xf32, #tpu.memory_space<vmem>>, vector<1x8x32xf32>
      %77 = vector.shape_cast %76 : vector<1x8x32xf32> to vector<8x32xf32>
      %78 = arith.truncf %77 : vector<8x32xf32> to vector<8x32xbf16>
      %c0_52 = arith.constant 0 : index
      %c0_53 = arith.constant 0 : index
      %79 = vector.load %arg6[%c0_52, %c0_53] : memref<32x32xbf16, #tpu.memory_space<vmem>>, vector<32x32xbf16>
      %cst_54 = arith.constant dense<0.000000e+00> : vector<8x32xf32>
      %80 = tpu.matmul %78, %79, %cst_54 {dimension_numbers = #tpu.dot_dimension_numbers<[1], [0], [0], [1], [0, 0, 1, 1], [], []>} : vector<8x32xbf16>, vector<32x32xbf16>, vector<8x32xf32> -> vector<8x32xf32>
      %81 = arith.truncf %80 : vector<8x32xf32> to vector<8x32xbf16>
      %c0_55 = arith.constant 0 : index
      %c0_56 = arith.constant 0 : index
      %c0_57 = arith.constant 0 : index
      %82 = vector.load %arg4[%c0_55, %c0_56, %c0_57] : memref<1x8x32xf32, #tpu.memory_space<vmem>>, vector<1x8x32xf32>
      %83 = vector.shape_cast %82 : vector<1x8x32xf32> to vector<8x32xf32>
      %84 = arith.truncf %83 : vector<8x32xf32> to vector<8x32xbf16>
      %c0_58 = arith.constant 0 : index
      %c0_59 = arith.constant 0 : index
      %85 = vector.load %arg7[%c0_58, %c0_59] : memref<32x32xbf16, #tpu.memory_space<vmem>>, vector<32x32xbf16>
      %cst_60 = arith.constant dense<0.000000e+00> : vector<8x32xf32>
      %86 = tpu.matmul %84, %85, %cst_60 {dimension_numbers = #tpu.dot_dimension_numbers<[1], [0], [0], [1], [0, 0, 1, 1], [], []>} : vector<8x32xbf16>, vector<32x32xbf16>, vector<8x32xf32> -> vector<8x32xf32>
      %87 = arith.truncf %86 : vector<8x32xf32> to vector<8x32xbf16>
      %88 = vector.extract_strided_slice %81 {offsets = [0, 0], sizes = [8, 8], strides = [1, 1]} : vector<8x32xbf16> to vector<8x8xbf16>
      %c0_61 = arith.constant 0 : index
      %c0_62 = arith.constant 0 : index
      %c0_63 = arith.constant 0 : index
      %89 = vector.load %arg12[%c0_61, %c0_62, %c0_63] : memref<4x8x8xbf16, #tpu.memory_space<vmem>>, vector<1x8x8xbf16>
      %90 = vector.shape_cast %89 : vector<1x8x8xbf16> to vector<8x8xbf16>
      %91 = vector.shape_cast %88 : vector<8x8xbf16> to vector<1x8x8xbf16>
      tpu.vector_store %arg12[%c0_61, %c0_62, %c0_63], %91 {strides = array<i32>} : memref<4x8x8xbf16, #tpu.memory_space<vmem>>, vector<1x8x8xbf16>,
      %92 = vector.extract_strided_slice %87 {offsets = [0, 0], sizes = [8, 8], strides = [1, 1]} : vector<8x32xbf16> to vector<8x8xbf16>
      %c0_64 = arith.constant 0 : index
      %c0_65 = arith.constant 0 : index
      %c0_66 = arith.constant 0 : index
      %93 = vector.load %arg13[%c0_64, %c0_65, %c0_66] : memref<4x8x8xbf16, #tpu.memory_space<vmem>>, vector<1x8x8xbf16>
      %94 = vector.shape_cast %93 : vector<1x8x8xbf16> to vector<8x8xbf16>
      %95 = vector.shape_cast %92 : vector<8x8xbf16> to vector<1x8x8xbf16>
      tpu.vector_store %arg13[%c0_64, %c0_65, %c0_66], %95 {strides = array<i32>} : memref<4x8x8xbf16, #tpu.memory_space<vmem>>, vector<1x8x8xbf16>,
      %96 = vector.extract_strided_slice %81 {offsets = [0, 8], sizes = [8, 8], strides = [1, 1]} : vector<8x32xbf16> to vector<8x8xbf16>
      %c1_67 = arith.constant 1 : index
      %c0_68 = arith.constant 0 : index
      %c0_69 = arith.constant 0 : index
      %97 = vector.load %arg12[%c1_67, %c0_68, %c0_69] : memref<4x8x8xbf16, #tpu.memory_space<vmem>>, vector<1x8x8xbf16>
      %98 = vector.shape_cast %97 : vector<1x8x8xbf16> to vector<8x8xbf16>
      %99 = vector.shape_cast %96 : vector<8x8xbf16> to vector<1x8x8xbf16>
      tpu.vector_store %arg12[%c1_67, %c0_68, %c0_69], %99 {strides = array<i32>} : memref<4x8x8xbf16, #tpu.memory_space<vmem>>, vector<1x8x8xbf16>,
      %100 = vector.extract_strided_slice %87 {offsets = [0, 8], sizes = [8, 8], strides = [1, 1]} : vector<8x32xbf16> to vector<8x8xbf16>
      %c1_70 = arith.constant 1 : index
      %c0_71 = arith.constant 0 : index
      %c0_72 = arith.constant 0 : index
      %101 = vector.load %arg13[%c1_70, %c0_71, %c0_72] : memref<4x8x8xbf16, #tpu.memory_space<vmem>>, vector<1x8x8xbf16>
      %102 = vector.shape_cast %101 : vector<1x8x8xbf16> to vector<8x8xbf16>
      %103 = vector.shape_cast %100 : vector<8x8xbf16> to vector<1x8x8xbf16>
      tpu.vector_store %arg13[%c1_70, %c0_71, %c0_72], %103 {strides = array<i32>} : memref<4x8x8xbf16, #tpu.memory_space<vmem>>, vector<1x8x8xbf16>,
      %104 = vector.extract_strided_slice %81 {offsets = [0, 16], sizes = [8, 8], strides = [1, 1]} : vector<8x32xbf16> to vector<8x8xbf16>
      %c2_73 = arith.constant 2 : index
      %c0_74 = arith.constant 0 : index
      %c0_75 = arith.constant 0 : index
      %105 = vector.load %arg12[%c2_73, %c0_74, %c0_75] : memref<4x8x8xbf16, #tpu.memory_space<vmem>>, vector<1x8x8xbf16>
      %106 = vector.shape_cast %105 : vector<1x8x8xbf16> to vector<8x8xbf16>
      %107 = vector.shape_cast %104 : vector<8x8xbf16> to vector<1x8x8xbf16>
      tpu.vector_store %arg12[%c2_73, %c0_74, %c0_75], %107 {strides = array<i32>} : memref<4x8x8xbf16, #tpu.memory_space<vmem>>, vector<1x8x8xbf16>,
      %108 = vector.extract_strided_slice %87 {offsets = [0, 16], sizes = [8, 8], strides = [1, 1]} : vector<8x32xbf16> to vector<8x8xbf16>
      %c2_76 = arith.constant 2 : index
      %c0_77 = arith.constant 0 : index
      %c0_78 = arith.constant 0 : index
      %109 = vector.load %arg13[%c2_76, %c0_77, %c0_78] : memref<4x8x8xbf16, #tpu.memory_space<vmem>>, vector<1x8x8xbf16>
      %110 = vector.shape_cast %109 : vector<1x8x8xbf16> to vector<8x8xbf16>
      %111 = vector.shape_cast %108 : vector<8x8xbf16> to vector<1x8x8xbf16>
      tpu.vector_store %arg13[%c2_76, %c0_77, %c0_78], %111 {strides = array<i32>} : memref<4x8x8xbf16, #tpu.memory_space<vmem>>, vector<1x8x8xbf16>,
      %112 = vector.extract_strided_slice %81 {offsets = [0, 24], sizes = [8, 8], strides = [1, 1]} : vector<8x32xbf16> to vector<8x8xbf16>
      %c3_79 = arith.constant 3 : index
      %c0_80 = arith.constant 0 : index
      %c0_81 = arith.constant 0 : index
      %113 = vector.load %arg12[%c3_79, %c0_80, %c0_81] : memref<4x8x8xbf16, #tpu.memory_space<vmem>>, vector<1x8x8xbf16>
      %114 = vector.shape_cast %113 : vector<1x8x8xbf16> to vector<8x8xbf16>
      %115 = vector.shape_cast %112 : vector<8x8xbf16> to vector<1x8x8xbf16>
      tpu.vector_store %arg12[%c3_79, %c0_80, %c0_81], %115 {strides = array<i32>} : memref<4x8x8xbf16, #tpu.memory_space<vmem>>, vector<1x8x8xbf16>,
      %116 = vector.extract_strided_slice %87 {offsets = [0, 24], sizes = [8, 8], strides = [1, 1]} : vector<8x32xbf16> to vector<8x8xbf16>
      %c3_82 = arith.constant 3 : index
      %c0_83 = arith.constant 0 : index
      %c0_84 = arith.constant 0 : index
      %117 = vector.load %arg13[%c3_82, %c0_83, %c0_84] : memref<4x8x8xbf16, #tpu.memory_space<vmem>>, vector<1x8x8xbf16>
      %118 = vector.shape_cast %117 : vector<1x8x8xbf16> to vector<8x8xbf16>
      %119 = vector.shape_cast %116 : vector<8x8xbf16> to vector<1x8x8xbf16>
      tpu.vector_store %arg13[%c3_82, %c0_83, %c0_84], %119 {strides = array<i32>} : memref<4x8x8xbf16, #tpu.memory_space<vmem>>, vector<1x8x8xbf16>,
    } else {
    }
    %c0 = arith.constant 0 : index
    %c0_1 = arith.constant 0 : index
    %c0_2 = arith.constant 0 : index
    %3 = vector.load %arg2[%c0, %c0_1, %c0_2] : memref<1x8x32xf32, #tpu.memory_space<vmem>>, vector<1x8x32xf32>
    %4 = vector.shape_cast %3 : vector<1x8x32xf32> to vector<8x32xf32>
    %5 = arith.truncf %4 : vector<8x32xf32> to vector<8x32xbf16>
    %c0_3 = arith.constant 0 : index
    %c0_4 = arith.constant 0 : index
    %6 = vector.load %arg5[%c0_3, %c0_4] : memref<32x32xbf16, #tpu.memory_space<vmem>>, vector<32x32xbf16>
    %cst = arith.constant dense<0.000000e+00> : vector<8x32xf32>
    %7 = tpu.matmul %5, %6, %cst {dimension_numbers = #tpu.dot_dimension_numbers<[1], [0], [0], [1], [0, 0, 1, 1], [], []>} : vector<8x32xbf16>, vector<32x32xbf16>, vector<8x32xf32> -> vector<8x32xf32>
    %8 = arith.truncf %7 : vector<8x32xf32> to vector<8x32xbf16>
    %9 = vector.extract_strided_slice %8 {offsets = [0, 0], sizes = [8, 8], strides = [1, 1]} : vector<8x32xbf16> to vector<8x8xbf16>
    %c0_5 = arith.constant 0 : index
    %c0_6 = arith.constant 0 : index
    %c0_7 = arith.constant 0 : index
    %10 = vector.load %arg11[%c0_5, %c0_6, %c0_7] : memref<4x8x8xbf16, #tpu.memory_space<vmem>>, vector<1x8x8xbf16>
    %11 = vector.shape_cast %10 : vector<1x8x8xbf16> to vector<8x8xbf16>
    %12 = vector.shape_cast %9 : vector<8x8xbf16> to vector<1x8x8xbf16>
    tpu.vector_store %arg11[%c0_5, %c0_6, %c0_7], %12 {strides = array<i32>} : memref<4x8x8xbf16, #tpu.memory_space<vmem>>, vector<1x8x8xbf16>,
    %13 = vector.extract_strided_slice %8 {offsets = [0, 8], sizes = [8, 8], strides = [1, 1]} : vector<8x32xbf16> to vector<8x8xbf16>
    %c1 = arith.constant 1 : index
    %c0_8 = arith.constant 0 : index
    %c0_9 = arith.constant 0 : index
    %14 = vector.load %arg11[%c1, %c0_8, %c0_9] : memref<4x8x8xbf16, #tpu.memory_space<vmem>>, vector<1x8x8xbf16>
    %15 = vector.shape_cast %14 : vector<1x8x8xbf16> to vector<8x8xbf16>
    %16 = vector.shape_cast %13 : vector<8x8xbf16> to vector<1x8x8xbf16>
    tpu.vector_store %arg11[%c1, %c0_8, %c0_9], %16 {strides = array<i32>} : memref<4x8x8xbf16, #tpu.memory_space<vmem>>, vector<1x8x8xbf16>,
    %17 = vector.extract_strided_slice %8 {offsets = [0, 16], sizes = [8, 8], strides = [1, 1]} : vector<8x32xbf16> to vector<8x8xbf16>
    %c2 = arith.constant 2 : index
    %c0_10 = arith.constant 0 : index
    %c0_11 = arith.constant 0 : index
    %18 = vector.load %arg11[%c2, %c0_10, %c0_11] : memref<4x8x8xbf16, #tpu.memory_space<vmem>>, vector<1x8x8xbf16>
    %19 = vector.shape_cast %18 : vector<1x8x8xbf16> to vector<8x8xbf16>
    %20 = vector.shape_cast %17 : vector<8x8xbf16> to vector<1x8x8xbf16>
    tpu.vector_store %arg11[%c2, %c0_10, %c0_11], %20 {strides = array<i32>} : memref<4x8x8xbf16, #tpu.memory_space<vmem>>, vector<1x8x8xbf16>,
    %21 = vector.extract_strided_slice %8 {offsets = [0, 24], sizes = [8, 8], strides = [1, 1]} : vector<8x32xbf16> to vector<8x8xbf16>
    %c3 = arith.constant 3 : index
    %c0_12 = arith.constant 0 : index
    %c0_13 = arith.constant 0 : index
    %22 = vector.load %arg11[%c3, %c0_12, %c0_13] : memref<4x8x8xbf16, #tpu.memory_space<vmem>>, vector<1x8x8xbf16>
    %23 = vector.shape_cast %22 : vector<1x8x8xbf16> to vector<8x8xbf16>
    %24 = vector.shape_cast %21 : vector<8x8xbf16> to vector<1x8x8xbf16>
    tpu.vector_store %arg11[%c3, %c0_12, %c0_13], %24 {strides = array<i32>} : memref<4x8x8xbf16, #tpu.memory_space<vmem>>, vector<1x8x8xbf16>,
    %c0_14 = arith.constant 0 : index
    %c0_15 = arith.constant 0 : index
    %c0_16 = arith.constant 0 : index
    %25 = vector.load %arg11[%c0_14, %c0_15, %c0_16] : memref<4x8x8xbf16, #tpu.memory_space<vmem>>, vector<4x8x8xbf16>
    %c0_17 = arith.constant 0 : index
    %c0_18 = arith.constant 0 : index
    %c0_19 = arith.constant 0 : index
    %26 = vector.load %arg12[%c0_17, %c0_18, %c0_19] : memref<4x8x8xbf16, #tpu.memory_space<vmem>>, vector<4x8x8xbf16>
    "tpu.trace_start"() <{level = 10 : i32, message = "hqd,hkd->hqk"}> : () -> ()
    %cst_20 = arith.constant dense<0.000000e+00> : vector<4x8x8xf32>
    %27 = tpu.matmul %25, %26, %cst_20 {dimension_numbers = #tpu.dot_dimension_numbers<[2], [2], [1], [1], [0, 0, 0, 1, 1, 1], [0], [0]>} : vector<4x8x8xbf16>, vector<4x8x8xbf16>, vector<4x8x8xf32> -> vector<4x8x8xf32>
    "tpu.trace_stop"() : () -> ()
    %cst_21 = arith.constant dense<0xFF800000> : vector<4x8xf32>
    %28 = vector.multi_reduction <maximumf>, %27, %cst_21 [2] : vector<4x8x8xf32> to vector<4x8xf32>
    %29 = vector.shape_cast %28 : vector<4x8xf32> to vector<4x8x1xf32>
    %30 = vector.broadcast %29 : vector<4x8x1xf32> to vector<4x8x8xf32>
    %31 = arith.subf %27, %30 : vector<4x8x8xf32>
    %32 = math.exp %31 : vector<4x8x8xf32>
    %cst_22 = arith.constant dense<0.000000e+00> : vector<4x8xf32>
    %33 = vector.multi_reduction <add>, %32, %cst_22 [2] : vector<4x8x8xf32> to vector<4x8xf32>
    %34 = vector.shape_cast %33 : vector<4x8xf32> to vector<4x8x1xf32>
    %35 = tpu.reciprocal %34 {approx = true} : vector<4x8x1xf32> -> vector<4x8x1xf32>
    %36 = vector.broadcast %35 : vector<4x8x1xf32> to vector<4x8x8xf32>
    %37 = arith.mulf %32, %36 : vector<4x8x8xf32>
    %38 = arith.truncf %37 : vector<4x8x8xf32> to vector<4x8x8xbf16>
    %c0_23 = arith.constant 0 : index
    %c0_24 = arith.constant 0 : index
    %c0_25 = arith.constant 0 : index
    %39 = vector.load %arg13[%c0_23, %c0_24, %c0_25] : memref<4x8x8xbf16, #tpu.memory_space<vmem>>, vector<4x8x8xbf16>
    "tpu.trace_start"() <{level = 10 : i32, message = "hqk,hkd->hqd"}> : () -> ()
    %cst_26 = arith.constant dense<0.000000e+00> : vector<4x8x8xf32>
    %40 = tpu.matmul %38, %39, %cst_26 {dimension_numbers = #tpu.dot_dimension_numbers<[2], [1], [1], [2], [0, 0, 0, 1, 1, 2], [0], [0]>} : vector<4x8x8xbf16>, vector<4x8x8xbf16>, vector<4x8x8xf32> -> vector<4x8x8xf32>
    %cst_27 = arith.constant 0.000000e+00 : f32
    "tpu.trace_stop"() : () -> ()
    %41 = vector.broadcast %cst_27 : f32 to vector<8x32xf32>
    %42 = vector.extract_strided_slice %40 {offsets = [0, 0, 0], sizes = [1, 8, 8], strides = [1, 1, 1]} : vector<4x8x8xf32> to vector<1x8x8xf32>
    %43 = vector.shape_cast %42 : vector<1x8x8xf32> to vector<8x8xf32>
    %44 = arith.truncf %43 : vector<8x8xf32> to vector<8x8xbf16>
    %c0_28 = arith.constant 0 : index
    %c0_29 = arith.constant 0 : index
    %c0_30 = arith.constant 0 : index
    %45 = vector.load %arg8[%c0_28, %c0_29, %c0_30] : memref<4x8x32xbf16, #tpu.memory_space<vmem>>, vector<1x8x32xbf16>
    %46 = vector.shape_cast %45 : vector<1x8x32xbf16> to vector<8x32xbf16>
    %cst_31 = arith.constant dense<0.000000e+00> : vector<8x32xf32>
    %47 = tpu.matmul %44, %46, %cst_31 {dimension_numbers = #tpu.dot_dimension_numbers<[1], [0], [0], [1], [0, 0, 1, 1], [], []>} : vector<8x8xbf16>, vector<8x32xbf16>, vector<8x32xf32> -> vector<8x32xf32>
    %48 = arith.addf %41, %47 : vector<8x32xf32>
    %49 = vector.extract_strided_slice %40 {offsets = [1, 0, 0], sizes = [1, 8, 8], strides = [1, 1, 1]} : vector<4x8x8xf32> to vector<1x8x8xf32>
    %50 = vector.shape_cast %49 : vector<1x8x8xf32> to vector<8x8xf32>
    %51 = arith.truncf %50 : vector<8x8xf32> to vector<8x8xbf16>
    %c1_32 = arith.constant 1 : index
    %c0_33 = arith.constant 0 : index
    %c0_34 = arith.constant 0 : index
    %52 = vector.load %arg8[%c1_32, %c0_33, %c0_34] : memref<4x8x32xbf16, #tpu.memory_space<vmem>>, vector<1x8x32xbf16>
    %53 = vector.shape_cast %52 : vector<1x8x32xbf16> to vector<8x32xbf16>
    %cst_35 = arith.constant dense<0.000000e+00> : vector<8x32xf32>
    %54 = tpu.matmul %51, %53, %cst_35 {dimension_numbers = #tpu.dot_dimension_numbers<[1], [0], [0], [1], [0, 0, 1, 1], [], []>} : vector<8x8xbf16>, vector<8x32xbf16>, vector<8x32xf32> -> vector<8x32xf32>
    %55 = arith.addf %48, %54 : vector<8x32xf32>
    %56 = vector.extract_strided_slice %40 {offsets = [2, 0, 0], sizes = [1, 8, 8], strides = [1, 1, 1]} : vector<4x8x8xf32> to vector<1x8x8xf32>
    %57 = vector.shape_cast %56 : vector<1x8x8xf32> to vector<8x8xf32>
    %58 = arith.truncf %57 : vector<8x8xf32> to vector<8x8xbf16>
    %c2_36 = arith.constant 2 : index
    %c0_37 = arith.constant 0 : index
    %c0_38 = arith.constant 0 : index
    %59 = vector.load %arg8[%c2_36, %c0_37, %c0_38] : memref<4x8x32xbf16, #tpu.memory_space<vmem>>, vector<1x8x32xbf16>
    %60 = vector.shape_cast %59 : vector<1x8x32xbf16> to vector<8x32xbf16>
    %cst_39 = arith.constant dense<0.000000e+00> : vector<8x32xf32>
    %61 = tpu.matmul %58, %60, %cst_39 {dimension_numbers = #tpu.dot_dimension_numbers<[1], [0], [0], [1], [0, 0, 1, 1], [], []>} : vector<8x8xbf16>, vector<8x32xbf16>, vector<8x32xf32> -> vector<8x32xf32>
    %62 = arith.addf %55, %61 : vector<8x32xf32>
    %63 = vector.extract_strided_slice %40 {offsets = [3, 0, 0], sizes = [1, 8, 8], strides = [1, 1, 1]} : vector<4x8x8xf32> to vector<1x8x8xf32>
    %64 = vector.shape_cast %63 : vector<1x8x8xf32> to vector<8x8xf32>
    %65 = arith.truncf %64 : vector<8x8xf32> to vector<8x8xbf16>
    %c3_40 = arith.constant 3 : index
    %c0_41 = arith.constant 0 : index
    %c0_42 = arith.constant 0 : index
    %66 = vector.load %arg8[%c3_40, %c0_41, %c0_42] : memref<4x8x32xbf16, #tpu.memory_space<vmem>>, vector<1x8x32xbf16>
    %67 = vector.shape_cast %66 : vector<1x8x32xbf16> to vector<8x32xbf16>
    %cst_43 = arith.constant dense<0.000000e+00> : vector<8x32xf32>
    %68 = tpu.matmul %65, %67, %cst_43 {dimension_numbers = #tpu.dot_dimension_numbers<[1], [0], [0], [1], [0, 0, 1, 1], [], []>} : vector<8x8xbf16>, vector<8x32xbf16>, vector<8x32xf32> -> vector<8x32xf32>
    %69 = arith.addf %62, %68 : vector<8x32xf32>
    %c0_44 = arith.constant 0 : index
    %c0_45 = arith.constant 0 : index
    %70 = vector.load %arg9[%c0_44, %c0_45] : memref<1x32xf32, #tpu.memory_space<vmem>>, vector<1x32xf32>
    %71 = vector.broadcast %70 : vector<1x32xf32> to vector<8x32xf32>
    %72 = arith.addf %69, %71 : vector<8x32xf32>
    %c0_46 = arith.constant 0 : index
    %c0_47 = arith.constant 0 : index
    %c0_48 = arith.constant 0 : index
    %73 = vector.load %arg10[%c0_46, %c0_47, %c0_48] : memref<1x8x32xf32, #tpu.memory_space<vmem>>, vector<1x8x32xf32>
    %74 = vector.shape_cast %73 : vector<1x8x32xf32> to vector<8x32xf32>
    %75 = vector.shape_cast %72 : vector<8x32xf32> to vector<1x8x32xf32>
    tpu.vector_store %arg10[%c0_46, %c0_47, %c0_48], %75 {strides = array<i32>} : memref<1x8x32xf32, #tpu.memory_space<vmem>>, vector<1x8x32xf32>,
    return
  }
  func.func @transform_0(%arg0: i32, %arg1: i32) -> (i32, i32, i32) {
    %c0_i32 = arith.constant 0 : i32
    %c0_i32_0 = arith.constant 0 : i32
    return %arg0, %arg1, %c0_i32 : i32, i32, i32
  }
  func.func @transform_1(%arg0: i32, %arg1: i32) -> (i32, i32, i32) {
    %c0_i32 = arith.constant 0 : i32
    %c0_i32_0 = arith.constant 0 : i32
    %c0_i32_1 = arith.constant 0 : i32
    return %arg0, %c0_i32, %c0_i32_0 : i32, i32, i32
  }
  func.func @transform_2(%arg0: i32, %arg1: i32) -> (i32, i32, i32) {
    %c0_i32 = arith.constant 0 : i32
    %c0_i32_0 = arith.constant 0 : i32
    %c0_i32_1 = arith.constant 0 : i32
    return %arg0, %c0_i32, %c0_i32_0 : i32, i32, i32
  }
  func.func @transform_3(%arg0: i32, %arg1: i32) -> (i32, i32) {
    %c0_i32 = arith.constant 0 : i32
    %c0_i32_0 = arith.constant 0 : i32
    %c0_i32_1 = arith.constant 0 : i32
    return %c0_i32, %c0_i32_0 : i32, i32
  }
  func.func @transform_4(%arg0: i32, %arg1: i32) -> (i32, i32) {
    %c0_i32 = arith.constant 0 : i32
    %c0_i32_0 = arith.constant 0 : i32
    %c0_i32_1 = arith.constant 0 : i32
    return %c0_i32, %c0_i32_0 : i32, i32
  }
  func.func @transform_5(%arg0: i32, %arg1: i32) -> (i32, i32) {
    %c0_i32 = arith.constant 0 : i32
    %c0_i32_0 = arith.constant 0 : i32
    %c0_i32_1 = arith.constant 0 : i32
    return %c0_i32, %c0_i32_0 : i32, i32
  }
  func.func @transform_6(%arg0: i32, %arg1: i32) -> (i32, i32, i32) {
    %c0_i32 = arith.constant 0 : i32
    %c0_i32_0 = arith.constant 0 : i32
    %c0_i32_1 = arith.constant 0 : i32
    %c0_i32_2 = arith.constant 0 : i32
    return %c0_i32, %c0_i32_0, %c0_i32_1 : i32, i32, i32
  }
  func.func @transform_7(%arg0: i32, %arg1: i32) -> (i32, i32) {
    %c0_i32 = arith.constant 0 : i32
    %c0_i32_0 = arith.constant 0 : i32
    %c0_i32_1 = arith.constant 0 : i32
    return %c0_i32, %c0_i32_0 : i32, i32
  }
  func.func @transform_8(%arg0: i32, %arg1: i32) -> (i32, i32, i32) {
    %c0_i32 = arith.constant 0 : i32
    %c0_i32_0 = arith.constant 0 : i32
    return %arg0, %arg1, %c0_i32 : i32, i32, i32
  }
}

</mosaic_0001>

<bundles_post_ra>
// kernel: tpu_custom_call.1
= control target key start
LH: loop header
LB: loop body
LE: loop exit
PB: predicated region body
PF: predicated region fallthrough
CT: control target
= control target key end

     0   :  { %s2615_s0 = inlined_call_operand.hbm [shape: f32[2,8,32], index: 0, kind: input, shape index: {}]   ;;  %s2616_s1 = inlined_call_operand.hbm [shape: f32[2,8,32], index: 1, kind: input, shape index: {}]   ;;  %s2617_s2 = inlined_call_operand.hbm [shape: f32[2,8,32], index: 2, kind: input, shape index: {}]   ;;  %s2618_s3 = inlined_call_operand.hbm [shape: bf16[32,32], index: 3, kind: input, shape index: {}]   ;;  %s2619_s4 = inlined_call_operand.hbm [shape: bf16[32,32], index: 4, kind: input, shape index: {}]   ;;  %s2620_s5 = inlined_call_operand.vmem [shape: bf16[32,32], index: 5, kind: input, shape index: {}]   ;;  %s2621_s6 = inlined_call_operand.hbm [shape: bf16[4,8,32], index: 6, kind: input, shape index: {}]   ;;  %s2622_s7 = inlined_call_operand.vmem [shape: f32[1,32], index: 7, kind: input, shape index: {}]   ;;  %s2623_s8 = inlined_call_operand.hbm [shape: f32[2,8,32], index: 8, kind: output, shape index: {}]  }
   0x1   :  { %2650 = sst [smem:[#allocation30_spill]] %s2616_s1 }
   0x2   :  { %2651 = sst [smem:[#allocation31_spill]] %s2618_s3 }
   0x3   :  { %2652 = sst [smem:[#allocation32_spill]] %s2622_s7 }
   0x4   :  { %2653 = sst [smem:[#allocation33_spill]] %s2623_s8 }
   0x5   :  { %13 = vsyncpa [#allocation6], 0 }
   0x6   :  { %15 = vsyncpa [#allocation6 + $0x1], 0 }
   0x7   :  { %16 = vsyncpa [#allocation9], 0 }
   0x8   :  { %18 = vsyncpa [#allocation9 + $0x1], 0 }
   0x9   :  { %19 = vsyncpa [#allocation12], 0 }
   0xa   :  { %20 = vsyncpa [#allocation15], 0 }
   0xb   :  { %21 = vsyncpa [#allocation7], 0 }
   0xc   :  { %23 = vsyncpa [#allocation7 + $0x1], 0  ;;  %s2151_s27 = smov 0   ;;  %s2153_s28 = smov 0  }
   0xd   :  { %s2155_s29 = smov 0   ;;  %s2157_s30 = smov 0  }
   0xe   :  { %s2159_s9 = smov 0   ;;  %s2161_s10 = smov 0  }
   0xf LB: > { %2654 = sst [smem:[#allocation22_spill]] %s2070_s27  ;;  %s2182_s11 = sadd.s32 4294967295, %s2090_s10   ;;  %s2090_s10 = sphi %s2161_s10, %s29_s10   ;;  %s2086_s9 = sphi %s2159_s9, %s2699_s9   ;;  %s2082_s30 = sphi %s2157_s30, %s2698_s30   ;;  %s2078_s29 = sphi %s2155_s29, %s2702_s29   ;;  %s2074_s28 = sphi %s2153_s28, %s2701_s28   ;;  %s2070_s27 = sphi %s2151_s27, %s2700_s27  }
  0x10   : > { %2655 = sst [smem:[#allocation23_spill]] %s2082_s30  ;;  %s1509_s12 = sadd.s32 4294967294, %s2090_s10  }
  0x11   : > { %2656 = sst [smem:[#allocation24_spill]] %s2086_s9  ;;  %p63_p0 = scmp.ne.s32.totalorder %s2074_s28, %s2070_s27 }
  0x12   : > { %2657 = sst [smem:[#allocation25_spill]] %s2090_s10  ;;  %p2624_p1 = scmp.eq.s32.totalorder %s2182_s11, 0 }
  0x13   : > { %p252_p3 = scmp.eq.s32.totalorder %s1509_s12, 1  ;;  %p1510_p5 = scmp.ge.s32.totalorder %s2090_s10, 1 }
  0x14   : > { %p2191_p4 = por %p2624_p1, %p63_p0  ;;  %p259_p7 = scmp.lt.s32.totalorder %s2090_s10, 3 }
  0x15   : > { %p2196_p6 = por %p252_p3, %p63_p0  ;;  %s2092_s16 = smov [#allocation11]  }
  0x16   : > { %s2658_s13 = scalar_select %p2191_p4, 1, 0 }
  0x17   : > { %s2659_s14 = scalar_select %p2196_p6, 1, 0 }
  0x18   : > { %p2201_p8 = pnand %p1510_p5, %p259_p7  ;;  %s271_s17 = sshll.u32 %s2092_s16, 4  ;;  %s272_s17 = int_to_ptr.vmem [resolvable:$true] %s271_s17 }
  0x19   : > { %2660 = sst [smem:[#allocation26_spill]] %s2659_s14  ;;  %s41_s19 = sadd.s32 1, %s2086_s9 }
  0x1a   : > { %s2661_s15 = scalar_select %p2201_p8, 1, 0 }
  0x1b   : > { %p1710_p9 = pneg %p2201_p8  ;;  %s2663_s3 = sld [smem:[#allocation31_spill]] }
  0x1d   : > { %p2210_p11 = pnand %p1710_p9, %p2624_p1 }
  0x1f   : > { %s2662_s18 = scalar_select %p2210_p11, 1, 0 }
  0x20   : > { %p2223_p13 = pneg %p2210_p11 }
  0x21   : > { %s1822_s22 = scalar_lea.hbm %s2663_s3, 256 }
  0x22   : > { %p1823_p12 = scmp.ne.s32.totalorder %s2663_s3, %s1822_s22  ;;  %p1829_p5 = scmp.lt.u32.totalorder %s1822_s22, %s2663_s3 }
  0x23   : > { %s2664_s25 = scalar_select %p2223_p13, 1, 0 }
  0x24   : > { %p1825_p0 = pnand %p2223_p13, %p1823_p12 }
  0x26   : > { %p1826_p3 = pneg %p1825_p0 }
  0x28   : > { %p1831_p7 = pnand %p1829_p5, %p1826_p3 }
  0x2a   : > { %1834 = shalt.err (!%p1831_p7)
}
  0x2b   : > { %s1835_s16 = scalar_lea.vmem %s272_s17, 256  ;;  %p1843_p2 = scmp.lt.s32.totalorder %s272_s17, %s272_s17 }
  0x2c   : > { %p1836_p9 = scmp.ne.s32.totalorder %s272_s17, %s1835_s16  ;;  %p1844_p6 = scmp.lt.s32.totalorder %s1835_s16, %s1835_s16 }
  0x2e   : > { %p1838_p10 = pnand %p1836_p9, %p2223_p13  ;;  %p1845_p4 = por %p1844_p6, %p1843_p2 }
  0x30   : > { %p1839_p1 = pneg %p1838_p10 }
  0x32   : > { %p1846_p8 = pnand %p1845_p4, %p1839_p1 }
  0x34   : > { %1849 = shalt.err (!%p1846_p8)
}
  0x35   : > { %s2627_s20 = smov 64   ;;  %s2629_s21 = smov 4  }
  0x36   : > { %1713 = dma.hbm_to_vmem [thread:$0]  (!%p2210_p11), %s2663_s3, 256, %s272_s17, [#allocation12], %s2627_s20, %s2627_s20, %s2629_s21  }
  0x37   : > { %p43_p1 = scmp.ge.s32.totalorder %s41_s19, 2  ;;  %s50_s24 = sadd.s32 1, %s2078_s29 }
  0x38   : > { %p57_p2 = scmp.ne.s32.totalorder %s2078_s29, %s2074_s28  ;;  %p58_p4 = scmp.eq.s32.totalorder %s2090_s10, 0 }
  0x39   : > { %s2704_s19 = smov (%p43_p1, %s41_s19), 0  ;;  %p2666_p8 = scmp.eq.s32.totalorder %s2182_s11, 1 }
  0x3a   : > { %2665 = sst [smem:[#allocation27_spill]] %s2704_s19  ;;  %p59_p6 = por %p58_p4, %p57_p2 }
  0x3b   : > { %p2250_p10 = por %p2666_p8, %p57_p2  ;;  %s45_s12 = ssub.s32 %s2086_s9, %s2704_s19 }
  0x3c   : > { %p1737_p12 = scmp.lt.s32.totalorder %s2090_s10, 2  ;;  %p48_p0 = scmp.eq.s32.totalorder %s45_s12, 0 }
  0x3d   : > { %s2667_s26 = scalar_select %p2250_p10, 1, 0 }
  0x3e   : > { %s2632_s16 = sand.u32 1, %s2078_s29   ;;  %s2263_s22 = sshll.u32 %s2086_s9, 7 }
  0x3f   : > { %2668 = sst [smem:[#allocation28_spill]] %s2667_s26  ;;  %s2260_s17 = sshll.u32 %s2632_s16, 3 }
  0x40   : > { %s2266_s23 = scalar_select %p48_p0, %s2078_s29, %s50_s24  }
  0x41   : > { %p2268_p3 = pnand %p1737_p12, %p59_p6  ;;  %s336_s21 = sand.u32 1, %s2090_s10  }
  0x42   : > { %2669 = sst [smem:[#allocation29_spill]] %s2266_s23  ;;  %s2671_s1 = sld [smem:[#allocation30_spill]] }
  0x43   : > { %s2670_s20 = scalar_select %p2268_p3, 1, 0 }
  0x44   : > { %s340_s16 = scalar_lea.vmem [#allocation8], %s2260_s17  ;;  %s2095_s24 = smov [#allocation13]  }
  0x45   : > { %s347_s9 = sshll.u32 %s340_s16, 4  ;;  %s2282_s23 = sshll.u32 %s2095_s24, 4  ;;  %s2280_s9 = int_to_ptr.vmem [resolvable:$true] %s347_s9  ;;  %s285_s23 = int_to_ptr.vmem [resolvable:$true] %s2282_s23 }
  0x46   : > { %s2284_s14 = scalar_lea.sflag [#allocation9], %s336_s21  ;;  %p2290_p7 = pneg %p2268_p3 }
  0x48   : > { %s2277_s12 = scalar_lea.hbm %s2671_s1, %s2263_s22  ;;  %s1855_s10 = scalar_lea.hbm %s2671_s1, 256 }
  0x49   : > { %s1850_s27 = scalar_lea.hbm %s2277_s12, 128  ;;  %p1856_p2 = scmp.lt.u32.totalorder %s2277_s12, %s2671_s1 }
  0x4a   : > { %p1851_p5 = scmp.ne.s32.totalorder %s2277_s12, %s1850_s27  ;;  %p1857_p4 = scmp.lt.u32.totalorder %s1855_s10, %s1850_s27 }
  0x4b   : > { %s2672_s3 = scalar_select %p2290_p7, 1, 0 }
  0x4c   : > { %p1853_p9 = pnand %p2290_p7, %p1851_p5  ;;  %p1858_p6 = por %p1857_p4, %p1856_p2 }
  0x4d   : > { %p1859_p8 = scmp.lt.u32.totalorder %s1850_s27, %s2277_s12 }
  0x4e   : > { %p1854_p1 = pneg %p1853_p9 }
  0x4f   : > { %p1860_p12 = por %p1859_p8, %p1858_p6 }
  0x51   : > { %p1861_p0 = pnand %p1860_p12, %p1854_p1 }
  0x53   : > { %1864 = shalt.err (!%p1861_p0)
}
  0x54   : > { %s1865_s21 = scalar_lea.vmem %s2280_s9, 128  ;;  %s2096_s19 = smov [#allocation8]  }
  0x55   : > { %p1866_p5 = scmp.ne.s32.totalorder %s2280_s9, %s1865_s21  ;;  %s1870_s16 = sshll.u32 %s2096_s19, 4  ;;  %s1871_s16 = int_to_ptr.vmem [resolvable:$false] %s1870_s16 }
  0x56   : > { %s1872_s8 = scalar_lea.vmem %s1871_s16, 256  ;;  %p1873_p11 = scmp.lt.s32.totalorder %s2280_s9, %s1871_s16 }
  0x57   : > { %p1868_p9 = pnand %p1866_p5, %p2290_p7  ;;  %p1874_p13 = scmp.lt.s32.totalorder %s1872_s8, %s1865_s21 }
  0x59   : > { %p1869_p10 = pneg %p1868_p9  ;;  %p1875_p2 = por %p1874_p13, %p1873_p11 }
  0x5b   : > { %p1876_p4 = pnand %p1875_p2, %p1869_p10 }
  0x5d   : > { %1879 = shalt.err (!%p1876_p4)
}
  0x5e   : > { %1726 = dma.hbm_to_vmem [thread:$0]  (!%p2268_p3), %s2277_s12, 128, %s2280_s9, %s2284_s14  }
  0x5f   : > { %s1880_s24 = scalar_lea.hbm %s2619_s4, 256  ;;  %p2673_p11 = scmp.ne.s32.totalorder %s2664_s25, 0 }
  0x60   : > { %p1881_p1 = scmp.ne.s32.totalorder %s2619_s4, %s1880_s24  ;;  %p1887_p6 = scmp.lt.u32.totalorder %s1880_s24, %s2619_s4 }
  0x62   : > { %p1883_p13 = pnand %p1881_p1, %p2673_p11 }
  0x64   : > { %p1884_p10 = pneg %p1883_p13 }
  0x66   : > { %p1889_p8 = pnand %p1887_p6, %p1884_p10 }
  0x68   : > { %1892 = shalt.err (!%p1889_p8)
}
  0x69   : > { %s1893_s8 = scalar_lea.vmem %s285_s23, 256  ;;  %p1901_p9 = scmp.lt.s32.totalorder %s285_s23, %s285_s23 }
  0x6a   : > { %p1894_p12 = scmp.ne.s32.totalorder %s285_s23, %s1893_s8  ;;  %p1902_p2 = scmp.lt.s32.totalorder %s1893_s8, %s1893_s8 }
  0x6c   : > { %p1896_p0 = pnand %p1894_p12, %p2673_p11  ;;  %p1903_p4 = por %p1902_p2, %p1901_p9 }
  0x6e   : > { %p1897_p5 = pneg %p1896_p0 }
  0x70   : > { %p1904_p3 = pnand %p1903_p4, %p1897_p5 }
  0x72   : > { %1907 = shalt.err (!%p1904_p3)
}
  0x73   : > { %p2674_p1 = scmp.ne.s32.totalorder %s2662_s18, 0  ;;  %s2675_s1 = smov 4  }
  0x74   : > { %s2676_s9 = smov 64   ;;  %s2097_s10 = smov [#allocation14]  }
  0x75   : > { %1716 = dma.hbm_to_vmem [thread:$0]  (!%p2674_p1), %s2619_s4, 256, %s285_s23, [#allocation12], %s2676_s9, %s2676_s9, %s2675_s1  }
  0x76   : > { %s300_s24 = sshll.u32 %s2097_s10, 4  ;;  %s1908_s16 = scalar_lea.hbm %s2621_s6, 256  ;;  %s301_s24 = int_to_ptr.vmem [resolvable:$true] %s300_s24 }
  0x77   : > { %p1909_p3 = scmp.ne.s32.totalorder %s2621_s6, %s1908_s16  ;;  %p1915_p6 = scmp.lt.u32.totalorder %s1908_s16, %s2621_s6 }
  0x79   : > { %p1911_p13 = pnand %p1909_p3, %p2673_p11 }
  0x7b   : > { %p1912_p10 = pneg %p1911_p13 }
  0x7d   : > { %p1917_p8 = pnand %p1915_p6, %p1912_p10 }
  0x7f   : > { %1920 = shalt.err (!%p1917_p8)
}
  0x80   : > { %s1921_s23 = scalar_lea.vmem %s301_s24, 256  ;;  %p1929_p9 = scmp.lt.s32.totalorder %s301_s24, %s301_s24 }
  0x81   : > { %p1922_p12 = scmp.ne.s32.totalorder %s301_s24, %s1921_s23  ;;  %p1930_p2 = scmp.lt.s32.totalorder %s1921_s23, %s1921_s23 }
  0x83   : > { %p1924_p0 = pnand %p1922_p12, %p2673_p11  ;;  %p1931_p4 = por %p1930_p2, %p1929_p9 }
  0x85   : > { %p1925_p5 = pneg %p1924_p0 }
  0x87   : > { %p1932_p7 = pnand %p1931_p4, %p1925_p5 }
  0x89   : > { %1935 = shalt.err (!%p1932_p7)
}
  0x8a   : > { %1719 = dma.hbm_to_vmem [thread:$0]  (!%p2674_p1), %s2621_s6, 256, %s301_s24, [#allocation15], %s2676_s9, %s2676_s9, %s2675_s1  }
  0x8b   : > { %s2361_s12 = scalar_lea.hbm %s2615_s0, %s2263_s22  ;;  %s321_s18 = scalar_lea.vmem [#allocation5], %s2260_s17 }
  0x8c   : > { %s329_s27 = sshll.u32 %s321_s18, 4  ;;  %s2677_s10 = sand.u32 1, %s2078_s29   ;;  %s330_s27 = int_to_ptr.vmem [resolvable:$true] %s329_s27 }
  0x8d   : > { %s318_s19 = scalar_lea.sflag [#allocation6], %s2677_s10  ;;  %s1936_s21 = scalar_lea.hbm %s2361_s12, 128 }
  0x8e   : > { %p1937_p7 = scmp.ne.s32.totalorder %s2361_s12, %s1936_s21  ;;  %p2678_p11 = scmp.ne.s32.totalorder %s2672_s3, 0 }
  0x8f   : > { %s1941_s24 = scalar_lea.hbm %s2615_s0, 256  ;;  %p1942_p1 = scmp.lt.u32.totalorder %s2361_s12, %s2615_s0 }
  0x90   : > { %p1939_p3 = pnand %p1937_p7, %p2678_p11  ;;  %p1943_p10 = scmp.lt.u32.totalorder %s1941_s24, %s1936_s21 }
  0x91   : > { %p1945_p8 = scmp.lt.u32.totalorder %s1936_s21, %s2361_s12 }
  0x92   : > { %p1940_p13 = pneg %p1939_p3  ;;  %p1944_p6 = por %p1943_p10, %p1942_p1 }
  0x94   : > { %p1946_p12 = por %p1945_p8, %p1944_p6 }
  0x96   : > { %p1947_p0 = pnand %p1946_p12, %p1940_p13 }
  0x98   : > { %1950 = shalt.err (!%p1947_p0)
}
  0x99   : > { %s1951_s23 = scalar_lea.vmem %s330_s27, 128  ;;  %s2098_s7 = smov [#allocation5]  }
  0x9a   : > { %p1952_p5 = scmp.ne.s32.totalorder %s330_s27, %s1951_s23  ;;  %s1956_s30 = sshll.u32 %s2098_s7, 4  ;;  %s1957_s30 = int_to_ptr.vmem [resolvable:$false] %s1956_s30 }
  0x9b   : > { %s1958_s25 = scalar_lea.vmem %s1957_s30, 256  ;;  %p1959_p4 = scmp.lt.s32.totalorder %s330_s27, %s1957_s30 }
  0x9c   : > { %p1954_p9 = pnand %p1952_p5, %p2678_p11  ;;  %p1960_p7 = scmp.lt.s32.totalorder %s1958_s25, %s1951_s23 }
  0x9e   : > { %p1955_p2 = pneg %p1954_p9  ;;  %p1961_p3 = por %p1960_p7, %p1959_p4 }
  0xa0   : > { %p1962_p1 = pnand %p1961_p3, %p1955_p2 }
  0xa2   : > { %1965 = shalt.err (!%p1962_p1)
}
  0xa3   : > { %p2679_p10 = scmp.ne.s32.totalorder %s2670_s20, 0  ;;  %s2387_s10 = scalar_lea.hbm %s2617_s2, %s2263_s22 }
  0xa4   : > { %s358_s21 = scalar_lea.vmem [#allocation10], %s2260_s17  ;;  %s1966_s9 = scalar_lea.hbm %s2387_s10, 128 }
  0xa5   : > { %1723 = dma.hbm_to_vmem [thread:$0]  (!%p2679_p10), %s2361_s12, 128, %s330_s27, %s318_s19  }
  0xa6   : > { %s365_s1 = sshll.u32 %s358_s21, 4  ;;  %p1967_p13 = scmp.ne.s32.totalorder %s2387_s10, %s1966_s9  ;;  %s366_s1 = int_to_ptr.vmem [resolvable:$true] %s365_s1 }
  0xa7   : > { %s1971_s12 = scalar_lea.hbm %s2617_s2, 256  ;;  %p1972_p12 = scmp.lt.u32.totalorder %s2387_s10, %s2617_s2 }
  0xa8   : > { %p1969_p6 = pnand %p1967_p13, %p2678_p11  ;;  %p1973_p0 = scmp.lt.u32.totalorder %s1971_s12, %s1966_s9 }
  0xa9   : > { %p1975_p9 = scmp.lt.u32.totalorder %s1966_s9, %s2387_s10 }
  0xaa   : > { %p1970_p8 = pneg %p1969_p6  ;;  %p1974_p5 = por %p1973_p0, %p1972_p12 }
  0xac   : > { %p1976_p2 = por %p1975_p9, %p1974_p5 }
  0xae   : > { %p1977_p4 = pnand %p1976_p2, %p1970_p8 }
  0xb0   : > { %1980 = shalt.err (!%p1977_p4)
}
  0xb1   : > { %s1981_s17 = scalar_lea.vmem %s366_s1, 128  ;;  %s2099_s22 = smov [#allocation10]  }
  0xb2   : > { %p1982_p7 = scmp.ne.s32.totalorder %s366_s1, %s1981_s17  ;;  %s1986_s8 = sshll.u32 %s2099_s22, 4  ;;  %s1987_s8 = int_to_ptr.vmem [resolvable:$false] %s1986_s8 }
  0xb3   : > { %s1988_s23 = scalar_lea.vmem %s1987_s8, 256  ;;  %p1989_p13 = scmp.lt.s32.totalorder %s366_s1, %s1987_s8 }
  0xb4   : > { %p1984_p3 = pnand %p1982_p7, %p2678_p11  ;;  %p1990_p6 = scmp.lt.s32.totalorder %s1988_s23, %s1981_s17 }
  0xb6   : > { %p1985_p1 = pneg %p1984_p3  ;;  %p1991_p10 = por %p1990_p6, %p1989_p13 }
  0xb8   : > { %p1992_p0 = pnand %p1991_p10, %p1985_p1 }
  0xba   : > { %1995 = shalt.err (!%p1992_p0)
}
  0xbb   : > { %p2680_p12 = scmp.ne.s32.totalorder %s2670_s20, 0  ;;  %p2681_p8 = scmp.ne.s32.totalorder %s2661_s15, 0 }
  0xbc   : > { %s2411_s3 = sand.u32 (!%p2681_p8), 1, %s2074_s28   ;;  %p2682_p11 = scmp.ne.s32.totalorder (!%p2681_p8), %s2658_s13, 0 }
  0xbd   : > { %1729 = dma.hbm_to_vmem [thread:$0]  (!%p2680_p12), %s2387_s10, 128, %s366_s1, %s2284_s14  }
  0xbe   : > { %374 = sbr.rel (%p2681_p8) target bundleno = 1550 (0x60e), region = 52  ;;  %s2414_s7 = sshll.u32 (!%p2681_p8), %s2411_s3, 3 }
  0xbf   : > { %s377_s30 = scalar_lea.sflag (!%p2681_p8), [#allocation6], %s2411_s3  ;;  %s380_s25 = scalar_lea.vmem (!%p2681_p8), [#allocation5], %s2414_s7 }
  0xc5   : > { %2049 = dma.done.wait (%p2682_p11), %s377_s30, 128  }
  0xc6   : > { %2051 = vsyncadd (%p2682_p11), %s377_s30, 4294967168  ;;  %s385_s14 = sand.u32 1, %s2182_s11   ;;  %s389_s20 = scalar_lea.vmem [#allocation8], %s2414_s7 }
  0xc7   : > { %s386_s15 = scalar_lea.sflag [#allocation9], %s385_s14 }
  0xc8   : > { %2053 = dma.done.wait (%p2682_p11), %s386_s15, 256  }
  0xc9   : > { %2055 = vsyncadd (%p2682_p11), %s386_s15, 4294967040  ;;  %s398_s26 = scalar_lea.vmem [#allocation10], %s2414_s7  ;;  %p2683_p10 = scmp.eq.s32.totalorder %s2182_s11, 0 }
  0xcb   : > { %2057 = dma.done.wait (%p2683_p10), [#allocation12], 512   ;;  %p2684_p5 = pmov %p2683_p10 }
  0xcd   : > { %2059 = vsyncadd (%p2684_p5), [#allocation12], 4294966784  ;;  %p2685_p9 = pmov %p2684_p5 }
  0xce   : > { %p2686_p2 = pmov %p2684_p5 }
  0xcf   : > { %2061 = dma.done.wait (%p2685_p9), [#allocation15], 256  }
  0xd0   : > { %2063 = vsyncadd (%p2686_p2), [#allocation15], 4294967040  ;;  %v2100_v0 = vmov 0.0   ;;  %vm2101_vm0 = vmmov 0   ;;  %v1800_v1 = vld [vmem:[#allocation13] sm:$0xff]   ;;  %v1801_v2 = vld [vmem:[#allocation13 + $0x8] sm:$0xff]  }
  0xd1   : > { %1594 = vmatprep.subr.bf16.mxu0 %v2100_v0  ;;  %1598 = vmatprep.mubr.msk.bf16.mxu0 %vm2101_vm0, %v2100_v0  ;;  %v458_v3 = vld [vmem:[%s389_s20] sm:$0xff]  ;;  %vm476_vm1 = vcmask 261120   ;;  %v622_v8 = vld [vmem:[%s380_s25] sm:$0xff]  ;;  %vm583_vm2 = vcmask 60416   ;;  %s2102_s21 = smov 120   ;;  %s2103_s1 = smov 112  }
  0xd2   : > { %1602 = vmatprep.subr.bf16.mxu1 %v2100_v0  ;;  %1606 = vmatprep.mubr.msk.bf16.mxu1 %vm2101_vm0, %v2100_v0  ;;  %v459_v4 = vpack.c.bf16 %v458_v3, %v458_v3  ;;  %v1804_v5 = vld [vmem:[%s2620_s5] sm:$0xff]   ;;  %v1803_v7 = vld [vmem:[#allocation11 + $0x8] sm:$0xff]   ;;  %v623_v9 = vpack.c.bf16 %v622_v8, %v622_v8  ;;  %v521_v11 = vld [vmem:[%s398_s26] sm:$0xff]  ;;  %vm713_vm3 = vcmask 64512   ;;  %s2104_s9 = smov 104   ;;  %vm953_vm4 = vcmask 1043456  }
  0xd3   : > { %1595 = vmatpush3.bf16.msra.mxu0 %v1800_v1  ;;  %v1802_v6 = vld [vmem:[#allocation11] sm:$0xff]   ;;  %1603 = vmatpush3.bf16.msra.mxu1 %v1804_v5  ;;  %v1805_v10 = vld [vmem:[%s2620_s5 + $0x8] sm:$0xff]   ;;  %v522_v12 = vpack.c.bf16 %v521_v11, %v521_v11  ;;  %s2687_s24 = sld [smem:[#allocation23_spill]]  ;;  %s2688_s27 = sld [smem:[#allocation32_spill]] }
  0xd4   : > { %1596 = vmatprep.subr.bf16.mxu0 %v2100_v0  ;;  %1604 = vmatprep.subr.bf16.mxu1 %v2100_v0  ;;  %s2689_s19 = sld [smem:[#allocation28_spill]]  ;;  %s452_s22 = scalar_lea.vmem [#allocation16], %s2414_s7 }
  0xd5   : > { %s1356_s8 = sshll.u32 %s452_s22, 4  ;;  %s2690_s25 = sld [smem:[#allocation33_spill]]  ;;  %s2567_s8 = int_to_ptr.vmem [resolvable:$true] %s1356_s8 }
  0xd6   : > { %s1342_s15 = scalar_lea.sflag [#allocation7], %s2411_s3  ;;  %s1996_s20 = scalar_lea.vmem %s2567_s8, 128 }
  0xd7   : > { %1597 = vmatpush3.bf16.msra.mxu0 %v1801_v2  ;;  %1605 = vmatpush3.bf16.msra.mxu1 %v1805_v10  ;;  %p1997_p4 = scmp.ne.s32.totalorder %s2567_s8, %s1996_s20  ;;  %s2105_s7 = smov [#allocation16]  }
  0xd8   : > { %1610 = vmatprep.subr.bf16.mxu0 %v2100_v0  ;;  %1618 = vmatprep.subr.bf16.mxu1 %v2100_v0  ;;  %s2000_s26 = sshll.u32 %s2105_s7, 4  ;;  %s2001_s26 = int_to_ptr.vmem [resolvable:$false] %s2000_s26 }
  0xd9   : > { %s1555_s17 = sshll.u32 %s2687_s24, 7  ;;  %s2002_s11 = scalar_lea.vmem %s2001_s26, 256 }
  0xda   : > { %1599 = vmatmul.mubr.msk.bf16.vlgmr.msra.gmra.mrb[0].mxu0 %vm476_vm1, %v459_v4  ;;  %1607 = vmatmul.mubr.msk.bf16.vlgmr.msra.gmra.mrb[0].mxu1 %vm476_vm1, %v522_v12  ;;  %p2691_p7 = scmp.ne.s32.totalorder %s2689_s19, 0  ;;  %p2003_p13 = scmp.lt.s32.totalorder %s2567_s8, %s2001_s26 }
  0xdb   : > { %1611 = vmatpush3.bf16.msra.mxu0 %v1802_v6  ;;  %1614 = vmatprep.mubr.msk.bf16.mxu0 %vm2101_vm0, %v2100_v0  ;;  %s2565_s14 = scalar_lea.hbm %s2690_s25, %s1555_s17  ;;  %p2004_p6 = scmp.lt.s32.totalorder %s2002_s11, %s1996_s20 }
  0xdc   : > { %1612 = vmatprep.subr.bf16.mxu0 %v2100_v0  ;;  %1620 = vmatprep.mubr.msk.bf16.mxu1 %vm2101_vm0, %v2100_v0  ;;  %p1998_p3 = pnand %p1997_p4, %p2691_p7 }
  0xdd   : > { %p2005_p0 = por %p2004_p6, %p2003_p13 }
  0xde   : > { %p1999_p1 = pneg %p1998_p3 }
  0xdf   : > { %1613 = vmatpush3.bf16.msra.mxu0 %v1803_v7 }
  0xe0   : > { %1624 = vmatprep.subr.bf16.mxu0 %v2100_v0  ;;  %p2006_p12 = pnand %p2005_p0, %p1999_p1 }
  0xe2   : > { %1615 = vmatmul.mubr.msk.bf16.vlgmr.msra.gmra.mrb[4].mxu0 %vm476_vm1, %v623_v9 }
  0xe3   : > { %1626 = vmatprep.mubr.msk.bf16.mxu0 %vm2101_vm0, %v2100_v0 }
 0x1ad   : > { %v514_v13 = vpop.f32.mrb[0].mxu0  ;;  %v576_v26 = vpop.f32.mrb[0].mxu1 }
 0x1ae   : > { %v520_v14 = vpack.c.bf16 %v514_v13, %v514_v13  ;;  %v1600_v15 = vpop.f32.mrb[1].mxu0  ;;  %v2481_v27 = vpack.c.bf16 %v576_v26, %v576_v26  ;;  %v1608_v28 = vpop.f32.mrb[1].mxu1 }
 0x1af   : > { %v517_v16 = vpop.f32.mrb[2].mxu0  ;;  %v579_v29 = vpop.f32.mrb[2].mxu1 }
 0x1b0   : > { %584 = vst.msk [vmem:[#allocation3] sm:$0xf] %vm583_vm2, %v520_v14  ;;  %589 = vrot.lane.b32.xlu0 %v520_v14, %s2102_s21  ;;  %v1601_v17 = vpop.f32.mrb[3].mxu0  ;;  %585 = vst.msk [vmem:[#allocation4] sm:$0xf] %vm583_vm2, %v2481_v27  ;;  %v1609_v30 = vpop.f32.mrb[3].mxu1 }
 0x1b4   : > { %602 = vrot.lane.b32.xlu0 %v520_v14, %s2103_s1 }
 0x1b5   : > { %v678_v18 = vpop.f32.mrb[4].mxu0 }
 0x1b6   : > { %v684_v19 = vpack.c.bf16 %v678_v18, %v678_v18  ;;  %v1616_v20 = vpop.f32.mrb[5].mxu0 }
 0x1b7   : > { %v681_v21 = vpop.f32.mrb[6].mxu0  ;;  %v709_v22 = vld [vmem:[#allocation3] sm:$0xf]  ;;  %v946_v46 = vld [vmem:[#allocation4] sm:$0xf] }
 0x1b8   : > { %686 = vst.msk [vmem:[#allocation2] sm:$0xf] %vm583_vm2, %v684_v19  ;;  %695 = vrot.lane.b32.xlu0 %v684_v19, %s2103_s1  ;;  %690 = vrot.lane.b32.xlu1 %v684_v19, %s2102_s21  ;;  %v1617_v23 = vpop.f32.mrb[7].mxu0  ;;  %v718_v24 = vsel %vm713_vm3, %v709_v22, 0  ;;  %v955_v47 = vsel %vm953_vm4, %v946_v46, 0 }
 0x1b9   : > { %1619 = vmatpush3.bf16.xpose.msra.mxu1 %v718_v24 }
 0x1ba   : > { %1630 = vmatprep.subr.bf16.mxu1 %v2100_v0 }
 0x1bc   : > { %612 = vrot.lane.b32.xlu1 %v520_v14, %s2104_s9 }
 0x1bf   : > { %v705_v25 = vld [vmem:[#allocation2] sm:$0xf] }
 0x1c0   : > { %700 = vrot.lane.b32.xlu1 %v684_v19, %s2104_s9  ;;  %1621 = vmatmul.mubr.msk.bf16.vlgmr.msra.gmra.mrb[4].mxu1 %vm713_vm3, %v705_v25 }
 0x1c1   : > { %1632 = vmatprep.mubr.msk.bf16.mxu1 %vm2101_vm0, %v2100_v0 }
 0x222   : > { %v590_v31 = vpop.permute.xlu0 %589 }
 0x223   : > { %593 = vst.msk [vmem:[#allocation3 + $0x4] sm:$0xf] %vm583_vm2, %v590_v31 }
 0x226   : > { %v603_v32 = vpop.permute.xlu0 %602 }
 0x227   : > { %606 = vst.msk [vmem:[#allocation3 + $0x8] sm:$0xf] %vm583_vm2, %v603_v32 }
 0x22a   : > { %v696_v33 = vpop.permute.xlu0 %695  ;;  %v691_v34 = vpop.permute.xlu1 %690  ;;  %v710_v35 = vld [vmem:[#allocation3 + $0x4] sm:$0xf] }
 0x22b   : > { %699 = vst.msk [vmem:[#allocation2 + $0x8] sm:$0xf] %vm583_vm2, %v696_v33  ;;  %694 = vst.msk [vmem:[#allocation2 + $0x4] sm:$0xf] %vm583_vm2, %v691_v34  ;;  %v764_v36 = vsel %vm713_vm3, %v710_v35, 0 }
 0x22c   : > { %1625 = vmatpush3.bf16.xpose.msra.mxu0 %v764_v36 }
 0x22d   : > { %1636 = vmatprep.subr.bf16.mxu0 %v2100_v0 }
 0x22e   : > { %v613_v37 = vpop.permute.xlu1 %612  ;;  %v711_v38 = vld [vmem:[#allocation3 + $0x8] sm:$0xf] }
 0x22f   : > { %616 = vst.msk [vmem:[#allocation3 + $0xc] sm:$0xf] %vm583_vm2, %v613_v37  ;;  %v810_v39 = vsel %vm713_vm3, %v711_v38, 0 }
 0x230   : > { %1631 = vmatpush3.bf16.xpose.msra.mxu1 %v810_v39 }
 0x231   : > { %1642 = vmatprep.subr.bf16.mxu1 %v2100_v0 }
 0x232   : > { %v701_v40 = vpop.permute.xlu1 %700  ;;  %v706_v41 = vld [vmem:[#allocation2 + $0x4] sm:$0xf]  ;;  %v707_v42 = vld [vmem:[#allocation2 + $0x8] sm:$0xf] }
 0x233   : > { %704 = vst.msk [vmem:[#allocation2 + $0xc] sm:$0xf] %vm583_vm2, %v701_v40  ;;  %1627 = vmatmul.mubr.msk.bf16.vlgmr.msra.gmra.mrb[8].mxu0 %vm713_vm3, %v706_v41 }
 0x234   : > { %1638 = vmatprep.mubr.msk.bf16.mxu0 %vm2101_vm0, %v2100_v0 }
 0x236   : > { %v712_v43 = vld [vmem:[#allocation3 + $0xc] sm:$0xf] }
 0x237   : > { %1633 = vmatmul.mubr.msk.bf16.vlgmr.msra.gmra.mrb[8].mxu1 %vm713_vm3, %v707_v42  ;;  %v856_v44 = vsel %vm713_vm3, %v712_v43, 0 }
 0x238   : > { %1637 = vmatpush3.bf16.xpose.msra.mxu0 %v856_v44  ;;  %1644 = vmatprep.mubr.msk.bf16.mxu1 %vm2101_vm0, %v2100_v0 }
 0x239   : > { %1648 = vmatprep.subr.bf16.mxu0 %v2100_v0  ;;  %1643 = vmatpush3.bf16.msra.mxu1 %v955_v47 }
 0x23a   : > { %v708_v45 = vld [vmem:[#allocation2 + $0xc] sm:$0xf]  ;;  %1654 = vmatprep.subr.bf16.mxu1 %v2100_v0 }
 0x23f   : > { %1639 = vmatmul.mubr.msk.bf16.vlgmr.msra.gmra.mrb[12].mxu0 %vm713_vm3, %v708_v45  ;;  %v1136_v45 = vld [vmem:[#allocation14] sm:$0xf] }
 0x240   : > { %1650 = vmatprep.mubr.msk.bf16.mxu0 %vm2101_vm0, %v2100_v0 }
 0x293   : > { %v754_v48 = vpop.f32.mrb[4].mxu1 }
 0x294   : > { %v1622_v49 = vpop.f32.mrb[5].mxu1  ;;  %v898_v50 = vsel %vm713_vm3, %v754_v48, -inf }
 0x295   : > { %899 = vmax.xlane.f32.xlu0 %v898_v50  ;;  %v757_v51 = vpop.f32.mrb[6].mxu1  ;;  %v1190_v50 = vsel %vm953_vm4, %v1136_v45, 0 }
 0x296   : > { %v1623_v52 = vpop.f32.mrb[7].mxu1 }
 0x297   : > { %v1139_v52 = vld [vmem:[#allocation14 + $0x4] sm:$0xf] }
 0x306   : > { %v800_v53 = vpop.f32.mrb[8].mxu0 }
 0x307   : > { %v1628_v54 = vpop.f32.mrb[9].mxu0  ;;  %v901_v55 = vsel %vm713_vm3, %v800_v53, -inf }
 0x308   : > { %902 = vmax.xlane.f32.xlu1 %v901_v55  ;;  %v803_v56 = vpop.f32.mrb[10].mxu0  ;;  %v1284_v54 = vld [vmem:[#allocation14 + $0xc] sm:$0xf] }
 0x309   : > { %v1629_v57 = vpop.f32.mrb[11].mxu0 }
 0x30a   : > { %v846_v58 = vpop.f32.mrb[8].mxu1 }
 0x30b   : > { %v1634_v59 = vpop.f32.mrb[9].mxu1  ;;  %v904_v60 = vsel %vm713_vm3, %v846_v58, -inf }
 0x30c   : > { %905 = vmax.xlane.f32.xlu0 %v904_v60  ;;  %v849_v61 = vpop.f32.mrb[10].mxu1 }
 0x30d   : > { %v1635_v62 = vpop.f32.mrb[11].mxu1  ;;  %v1234_v61 = vld [vmem:[#allocation14 + $0x8] sm:$0xf] }
 0x312   : > { %v892_v63 = vpop.f32.mrb[12].mxu0 }
 0x313   : > { %v1640_v1 = vpop.f32.mrb[13].mxu0  ;;  %v907_v2 = vsel %vm713_vm3, %v892_v63, -inf }
 0x314   : > { %908 = vmax.xlane.f32.xlu0 %v907_v2  ;;  %v895_v3 = vpop.f32.mrb[14].mxu0  ;;  %v1239_v2 = vsel %vm953_vm4, %v1234_v61, 0 }
 0x315   : > { %v1641_v4 = vpop.f32.mrb[15].mxu0 }
 0x319   : > { %597 = vrot.lane.b32.xlu1 %v2481_v27, %s2102_s21 }
 0x322   : > { %v900_v5 = vpop.xlane.xlu0 %899 }
 0x323   : > { %v910_v6 = vsub.f32 %v754_v48, %v900_v5 }
 0x325   : > { %v914_v7 = vmul.f32 1.442695, %v910_v6 }
 0x327   : > { %1806 = vpow2.f32 %v914_v7 }
 0x331   : > { %v1807_v8 = vpop.eup %1806 }
 0x332   : > { %v922_v9 = vsel %vm713_vm3, %v1807_v8, 0.0 }
 0x33d   : > { %923 = vadd.xlane.f32.xlu1 %v922_v9 }
 0x395   : > { %v903_v10 = vpop.xlane.xlu1 %902 }
 0x396   : > { %v911_v11 = vsub.f32 %v800_v53, %v903_v10  ;;  %v1144_v53 = vsel %vm953_vm4, %v1139_v52, 0 }
 0x398   : > { %v916_v12 = vmul.f32 1.442695, %v911_v11 }
 0x399   : > { %v906_v13 = vpop.xlane.xlu0 %905  ;;  %v598_v14 = vpop.permute.xlu1 %597 }
 0x39a   : > { %1808 = vpow2.f32 %v916_v12  ;;  %v912_v15 = vsub.f32 %v846_v58, %v906_v13  ;;  %601 = vst.msk [vmem:[#allocation4 + $0x4] sm:$0xf] %vm583_vm2, %v598_v14  ;;  %v1289_v58 = vsel %vm953_vm4, %v1284_v54, 0 }
 0x39c   : > { %v918_v16 = vmul.f32 1.442695, %v912_v15 }
 0x39e   : > { %1810 = vpow2.f32 %v918_v16 }
 0x3a1   : > { %v909_v17 = vpop.xlane.xlu0 %908  ;;  %v947_v18 = vld [vmem:[#allocation4 + $0x4] sm:$0xf] }
 0x3a2   : > { %v913_v19 = vsub.f32 %v892_v63, %v909_v17  ;;  %v1001_v20 = vsel %vm953_vm4, %v947_v18, 0 }
 0x3a3   : > { %1649 = vmatpush3.bf16.msra.mxu0 %v1001_v20 }
 0x3a4   : > { %v1809_v21 = vpop.eup %1808  ;;  %v920_v22 = vmul.f32 1.442695, %v913_v19  ;;  %1660 = vmatprep.subr.bf16.mxu0 %v2100_v0 }
 0x3a5   : > { %v925_v23 = vsel %vm713_vm3, %v1809_v21, 0.0 }
 0x3a6   : > { %1812 = vpow2.f32 %v920_v22  ;;  %926 = vadd.xlane.f32.xlu0 %v925_v23 }
 0x3a8   : > { %v1811_v24 = vpop.eup %1810 }
 0x3a9   : > { %v928_v25 = vsel %vm713_vm3, %v1811_v24, 0.0 }
 0x3aa   : > { %929 = vadd.xlane.f32.xlu1 %v928_v25 }
 0x3b0   : > { %v1813_v26 = vpop.eup %1812 }
 0x3b1   : > { %v931_v28 = vsel %vm713_vm3, %v1813_v26, 0.0 }
 0x3b2   : > { %932 = vadd.xlane.f32.xlu0 %v931_v28 }
 0x3bb   : > { %617 = vrot.lane.b32.xlu1 %v2481_v27, %s2104_s9 }
 0x3c8   : > { %607 = vrot.lane.b32.xlu0 %v2481_v27, %s2103_s1 }
 0x3ca   : > { %v924_v29 = vpop.xlane.xlu1 %923 }
 0x3cb   : > { %1814 = vrcp.f32 %v924_v29 }
 0x3d5   : > { %v1815_v30 = vpop.eup %1814 }
 0x3d6   : > { %v938_v31 = vmul.f32 %v1815_v30, %v1807_v8  ;;  %v1553_v30 = vld [vmem:[%s2688_s27] ss:$0 sm:$0xff] }
 0x3d8   : > { %v942_v32 = vpack.c.bf16 %v938_v31, %v938_v31 }
 0x3da   : > { %1645 = vmatmul.mubr.msk.bf16.vlgmr.msra.gmra.mrb[12].mxu1 %vm713_vm3, %v942_v32 }
 0x3db   : > { %1656 = vmatprep.mubr.msk.bf16.mxu1 %vm2101_vm0, %v2100_v0 }
 0x433   : > { %v927_v33 = vpop.xlane.xlu0 %926 }
 0x434   : > { %1816 = vrcp.f32 %v927_v33 }
 0x437   : > { %v930_v34 = vpop.xlane.xlu1 %929 }
 0x438   : > { %1818 = vrcp.f32 %v930_v34 }
 0x43b   : > { %v618_v35 = vpop.permute.xlu1 %617 }
 0x43c   : > { %621 = vst.msk [vmem:[#allocation4 + $0xc] sm:$0xf] %vm583_vm2, %v618_v35 }
 0x43e   : > { %v1817_v36 = vpop.eup %1816 }
 0x43f   : > { %v939_v37 = vmul.f32 %v1817_v36, %v1809_v21  ;;  %v933_v27 = vpop.xlane.xlu0 %932 }
 0x440   : > { %1820 = vrcp.f32 %v933_v27 }
 0x441   : > { %v943_v38 = vpack.c.bf16 %v939_v37, %v939_v37 }
 0x442   : > { %v1819_v42 = vpop.eup %1818 }
 0x443   : > { %1651 = vmatmul.mubr.msk.bf16.vlgmr.msra.gmra.mrb[16].mxu0 %vm713_vm3, %v943_v38  ;;  %v608_v39 = vpop.permute.xlu0 %607  ;;  %v949_v40 = vld [vmem:[#allocation4 + $0xc] sm:$0xf]  ;;  %v940_v44 = vmul.f32 %v1819_v42, %v1811_v24 }
 0x444   : > { %611 = vst.msk [vmem:[#allocation4 + $0x8] sm:$0xf] %vm583_vm2, %v608_v39  ;;  %v1093_v41 = vsel %vm953_vm4, %v949_v40, 0  ;;  %1662 = vmatprep.mubr.msk.bf16.mxu0 %vm2101_vm0, %v2100_v0 }
 0x445   : > { %1661 = vmatpush3.bf16.msra.mxu0 %v1093_v41  ;;  %v944_v51 = vpack.c.bf16 %v940_v44, %v940_v44 }
 0x446   : > { %1672 = vmatprep.subr.bf16.mxu0 %v2100_v0 }
 0x44a   : > { %v1821_v43 = vpop.eup %1820 }
 0x44b   : > { %v941_v46 = vmul.f32 %v1821_v43, %v1813_v26  ;;  %v948_v47 = vld [vmem:[#allocation4 + $0x8] sm:$0xf] }
 0x44c   : > { %v1047_v48 = vsel %vm953_vm4, %v948_v47, 0 }
 0x44d   : > { %1655 = vmatpush3.bf16.msra.mxu1 %v1047_v48  ;;  %v945_v49 = vpack.c.bf16 %v941_v46, %v941_v46 }
 0x44e   : > { %1666 = vmatprep.subr.bf16.mxu1 %v2100_v0 }
 0x44f   : > { %1663 = vmatmul.mubr.msk.bf16.vlgmr.msra.gmra.mrb[20].mxu0 %vm713_vm3, %v945_v49 }
 0x450   : > { %1657 = vmatmul.mubr.msk.bf16.vlgmr.msra.gmra.mrb[16].mxu1 %vm713_vm3, %v944_v51  ;;  %1673 = vmatpush3.bf16.msra.mxu0 %v1190_v50 }
 0x451   : > { %1674 = vmatprep.mubr.msk.bf16.mxu0 %vm2101_vm0, %v2100_v0  ;;  %1668 = vmatprep.mubr.msk.bf16.mxu1 %vm2101_vm0, %v2100_v0 }
 0x452   : > { %1684 = vmatprep.subr.bf16.mxu0 %v2100_v0  ;;  %1667 = vmatpush3.bf16.msra.mxu1 %v1144_v53 }
 0x453   : > { %1678 = vmatprep.subr.bf16.mxu1 %v2100_v0 }
 0x4ad   : > { %v991_v55 = vpop.f32.mrb[12].mxu1 }
 0x4ae   : > { %v1135_v56 = vpack.c.bf16 %v991_v55, %v991_v55  ;;  %v1646_v57 = vpop.f32.mrb[13].mxu1 }
 0x4af   : > { %v994_v59 = vpop.f32.mrb[14].mxu1 }
 0x4b0   : > { %v1647_v60 = vpop.f32.mrb[15].mxu1  ;;  %1675 = vmatmul.mubr.msk.bf16.vlgmr.msra.gmra.mrb[24].mxu0 %vm713_vm3, %v1135_v56 }
 0x4b1   : > { %1685 = vmatpush3.bf16.msra.mxu0 %v1289_v58  ;;  %1686 = vmatprep.mubr.msk.bf16.mxu0 %vm2101_vm0, %v2100_v0 }
 0x516   : > { %v1037_v62 = vpop.f32.mrb[16].mxu0 }
 0x517   : > { %v1137_v63 = vpack.c.bf16 %v1037_v62, %v1037_v62  ;;  %v1652_v1 = vpop.f32.mrb[17].mxu0 }
 0x518   : > { %v1040_v3 = vpop.f32.mrb[18].mxu0 }
 0x519   : > { %v1653_v4 = vpop.f32.mrb[19].mxu0  ;;  %1669 = vmatmul.mubr.msk.bf16.vlgmr.msra.gmra.mrb[20].mxu1 %vm713_vm3, %v1137_v63 }
 0x51a   : > { %1679 = vmatpush3.bf16.msra.mxu1 %v1239_v2  ;;  %1680 = vmatprep.mubr.msk.bf16.mxu1 %vm2101_vm0, %v2100_v0 }
 0x522   : > { %v1129_v5 = vpop.f32.mrb[20].mxu0 }
 0x523   : > { %v1282_v6 = vpack.c.bf16 %v1129_v5, %v1129_v5  ;;  %v1083_v7 = vpop.f32.mrb[16].mxu1  ;;  %v1664_v8 = vpop.f32.mrb[21].mxu0 }
 0x524   : > { %v1232_v9 = vpack.c.bf16 %v1083_v7, %v1083_v7  ;;  %v1658_v10 = vpop.f32.mrb[17].mxu1  ;;  %v1132_v11 = vpop.f32.mrb[22].mxu0 }
 0x525   : > { %v1086_v12 = vpop.f32.mrb[18].mxu1  ;;  %v1665_v13 = vpop.f32.mrb[23].mxu0  ;;  %1687 = vmatmul.mubr.msk.bf16.vlgmr.msra.gmra.mrb[28].mxu0 %vm713_vm3, %v1282_v6 }
 0x526   : > { %v1659_v14 = vpop.f32.mrb[19].mxu1  ;;  %1681 = vmatmul.mubr.msk.bf16.vlgmr.msra.gmra.mrb[24].mxu1 %vm713_vm3, %v1232_v9 }
 0x583   : > { %v1226_v15 = vpop.f32.mrb[24].mxu0 }
 0x584   : > { %v1676_v16 = vpop.f32.mrb[25].mxu0 }
 0x585   : > { %v1229_v17 = vpop.f32.mrb[26].mxu0 }
 0x586   : > { %v1677_v18 = vpop.f32.mrb[27].mxu0 }
 0x5ec   : > { %v1180_v0 = vpop.f32.mrb[20].mxu1 }
 0x5ed   : > { %v1227_v19 = vadd.f32 %v1226_v15, %v1180_v0  ;;  %v1670_v20 = vpop.f32.mrb[21].mxu1 }
 0x5ee   : > { %v1183_v21 = vpop.f32.mrb[22].mxu1 }
 0x5ef   : > { %v1671_v22 = vpop.f32.mrb[23].mxu1 }
 0x5f8   : > { %v1325_v23 = vpop.f32.mrb[28].mxu0 }
 0x5f9   : > { %v1275_v24 = vpop.f32.mrb[24].mxu1  ;;  %v1688_v25 = vpop.f32.mrb[29].mxu0 }
 0x5fa   : > { %v1281_v26 = vadd.f32 %v1275_v24, %v1227_v19  ;;  %v1682_v28 = vpop.f32.mrb[25].mxu1  ;;  %v1328_v29 = vpop.f32.mrb[30].mxu0 }
 0x5fb   : > { %v1278_v31 = vpop.f32.mrb[26].mxu1  ;;  %v1689_v32 = vpop.f32.mrb[31].mxu0 }
 0x5fc   : > { %v1331_v33 = vadd.f32 %v1325_v23, %v1281_v26  ;;  %v1683_v34 = vpop.f32.mrb[27].mxu1 }
 0x5fe   : > { %v1339_v35 = vadd.f32 %v1553_v30, %v1331_v33 }
 0x600   : > { %1340 = vst.msk [vmem:[%s452_s22] sm:$0xff] %vm476_vm1, %v1339_v35 }
 0x601   : > { %2009 = shalt.err (!%p2006_p12)
}
 0x602   : > { %s2010_s3 = scalar_lea.hbm %s2565_s14, 128  ;;  %s2014_s10 = scalar_lea.hbm %s2690_s25, 256 }
 0x603   : > { %p2011_p8 = scmp.ne.s32.totalorder %s2565_s14, %s2010_s3  ;;  %p2015_p5 = scmp.lt.u32.totalorder %s2565_s14, %s2690_s25 }
 0x604   : > { %p2016_p9 = scmp.lt.u32.totalorder %s2014_s10, %s2010_s3  ;;  %p2018_p4 = scmp.lt.u32.totalorder %s2010_s3, %s2565_s14 }
 0x605   : > { %p2012_p11 = pnand %p2011_p8, %p2691_p7 }
 0x606   : > { %p2017_p2 = por %p2016_p9, %p2015_p5 }
 0x607   : > { %p2013_p10 = pneg %p2012_p11 }
 0x608   : > { %p2019_p3 = por %p2018_p4, %p2017_p2 }
 0x60a   : > { %p2020_p1 = pnand %p2019_p3, %p2013_p10 }
 0x60c   : > { %2023 = shalt.err (!%p2020_p1)
}
 0x60d   : > { %1708 = dma.vmem_to_hbm [thread:$0]  (%p2691_p7), %s2567_s8, 128, %s2565_s14, %s1342_s15  }
 0x60e PF: > { %s2692_s9 = sld [smem:[#allocation22_spill]]  ;;  %s2693_s24 = sld [smem:[#allocation26_spill]] }
 0x60f   : > { %s2694_s16 = sld [smem:[#allocation25_spill]] }
 0x614   : > { %s1368_s12 = sand.u32 1, %s2692_s9   ;;  %p2695_p13 = scmp.ne.s32.totalorder %s2693_s24, 0 }
 0x615   : > { %p2696_p6 = scmp.ge.s32.totalorder %s2694_s16, 2  ;;  %s1369_s27 = scalar_lea.sflag [#allocation7], %s1368_s12 }
 0x617   : > { %p1731_p0 = pnand %p2696_p6, %p2695_p13 }
 0x619   : > { %2065 = dma.done.wait (!%p1731_p0), %s1369_s27, 128  }
 0x61a   : > { %2067 = vsyncadd (!%p1731_p0), %s1369_s27, 4294967168  ;;  %s29_s10 = sadd.s32 1, %s2694_s16   ;;  %s2697_s19 = sld [smem:[#allocation29_spill]] }
 0x61b   : > { %p26_p12 = scmp.ge.s32.totalorder %s29_s10, 4   ;;  %s2698_s30 = sld [smem:[#allocation24_spill]] }
 0x61c   : > { %s2699_s9 = sld [smem:[#allocation27_spill]]  ;;  %s2700_s27 = smov %s2074_s28 }
 0x61d   : > { %s2701_s28 = smov %s2078_s29  ;;  %28 = sbr.rel (!%p26_p12) target bundleno = 15 (0xf), region = 149 }
 0x620   : > { %s2702_s29 = smov %s2697_s19 }
 0x624   :  { %1374 = vsyncpa [#allocation6], 1 }
 0x625   :  { %1376 = vsyncpa [#allocation6 + $0x1], 1 }
 0x626   :  { %1377 = vsyncpa [#allocation9], 1 }
 0x627   :  { %1379 = vsyncpa [#allocation9 + $0x1], 1 }
 0x628   :  { %1380 = vsyncpa [#allocation12], 1 }
 0x629   :  { %1381 = vsyncpa [#allocation15], 1 }
 0x62a   :  { %1382 = vsyncpa [#allocation7], 1 }
 0x62b   :  { %1384 = vsyncpa [#allocation7 + $0x1], 1 }

</bundles_post_ra>
